<compile_context>
chip_gen: v7x
topology: tpu7x:2x2x1
jax: 0.10.0
libtpu: 0.0.40
codegen_flags: <defaults>
</compile_context>

<pallas_src>
import jax
import jax.numpy as jnp
from jax.experimental import pallas as pl
from jax.experimental.pallas import tpu as pltpu


def _critic_kernel(s_ref, a_ref, w1_ref, b1_ref, w2_ref, b2_ref, w3_ref,
                   b3_ref, o_ref):
    # Fused concat: x = [state | action] built in registers (lane dim), so the
    # concatenated input never exists in HBM and layer 1 is ONE MXU pass with
    # K = state_dim + action_dim.
    x = jnp.concatenate([s_ref[...], a_ref[...]], axis=1)

    mxu_dtype = w1_ref.dtype                     # bf16 weights -> bf16 MXU ops
    h1 = jnp.dot(x.astype(mxu_dtype), w1_ref[...],
                 preferred_element_type=jnp.float32)
    h1 = jnp.maximum(h1 + b1_ref[...], 0.0)      # bias + ReLU in f32

    h2 = jnp.dot(h1.astype(mxu_dtype), w2_ref[...],
                 preferred_element_type=jnp.float32)
    h2 = jnp.maximum(h2 + b2_ref[...], 0.0)

    # Layer 3 (H -> 1) on the VPU: multiply + lane reduction; an MXU pass here
    # would have a single useful output lane.  w3_ref is an f32 (1, H) row.
    q = jnp.sum(h2 * w3_ref[...], axis=-1, keepdims=True)       # (tb, 1)
    o_ref[...] = q + b3_ref[...]


def _vmem_capacity_bytes():
    try:
        return int(pltpu.get_tpu_info().vmem_capacity_bytes)
    except Exception:
        return 64 * 1024 * 1024                  # conservative: v7x physical


def _vmem_estimate_bytes(tb, in_dim, hidden, w_itemsize):
    """Rough per-step VMEM footprint for batch tile `tb`."""
    inputs = 2 * tb * in_dim * 4                 # state+action, double-buffered
    inter = 2 * tb * hidden * 4                  # h1, h2 live f32 values
    out = 2 * tb * 4                             # (tb, 1) output, double-buffered
    weights = 2 * ((in_dim + hidden) * hidden * w_itemsize
                   + (3 * hidden + 1) * 4)       # worst case: double-buffered
    return inputs + inter + out + weights


def _pick_batch_tile(batch, in_dim, hidden, w_itemsize, budget):
    """Largest friendly batch tile (multiple of 8, divides B) under `budget`."""
    for tb in (4096, 2048, 1024, 512, 256, 128, 64, 32, 16, 8):
        if batch % tb == 0 and _vmem_estimate_bytes(
                tb, in_dim, hidden, w_itemsize) <= budget:
            return tb
    return batch                                 # tiny / ragged batch: 1 block


def critic_forward(state, action, params, *, batch_tile=None,
                   core_parallel=False, single_buffer_weights=False):
    """Pallas-backed Critic.forward(state, action).

    core_parallel:        set True on v7x to split batch tiles over its 2 TCs.
    single_buffer_weights: set True on VMEM-tight chips (v7x) to drop the
                           default double buffer on the pinned weight blocks.
    """
    w1, b1, w2, b2, w3_row, b3 = params
    batch, state_dim = state.shape
    action_dim = action.shape[1]
    in_dim = state_dim + action_dim
    hidden = w2.shape[0]
    out_size = b3.shape[1]
    assert w1.shape == (in_dim, hidden)
    assert out_size == 1, "final VPU reduction assumes output_size == 1"

    w_itemsize = jnp.dtype(w1.dtype).itemsize
    cap = _vmem_capacity_bytes()
    budget = max(16 * 1024 * 1024, min(cap // 2, 64 * 1024 * 1024))

    tb = batch_tile if batch_tile is not None else _pick_batch_tile(
        batch, in_dim, hidden, w_itemsize, budget)
    if batch % tb != 0 or (tb != batch and tb % 8 != 0):
        tb = batch                               # fall back to one whole block
    grid = (batch // tb,)

    # Advisory cost so XLA can overlap this small call with surrounding ops.
    flops = 2 * batch * (in_dim * hidden + hidden * hidden + hidden)
    bytes_accessed = (4 * batch * (in_dim + out_size)
                      + w_itemsize * (in_dim + hidden) * hidden
                      + 4 * (3 * hidden + 1))

    weight_mode = pl.Buffered(1) if single_buffer_weights else None

    def batch_spec(cols):
        return pl.BlockSpec((tb, cols), lambda i: (i, 0))

    def pinned(arr):
        # Same block index every grid step -> weights stay VMEM-resident.
        if weight_mode is None:
            return pl.BlockSpec(arr.shape, lambda i: (0, 0))
        return pl.BlockSpec(arr.shape, lambda i: (0, 0),
                            pipeline_mode=weight_mode)

    dim_sem = (pltpu.CORE_PARALLEL,) if core_parallel else ("parallel",)

    return pl.pallas_call(
        _critic_kernel,
        out_shape=jax.ShapeDtypeStruct((batch, out_size), jnp.float32),
        grid=grid,
        in_specs=[
            batch_spec(state_dim),               # state   (tiled over batch)
            batch_spec(action_dim),              # action  (tiled over batch)
            pinned(w1),                          # W1 (in_dim, H)  bf16
            pinned(b1),                          # b1 (1, H)       f32
            pinned(w2),                          # W2 (H, H)       bf16
            pinned(b2),                          # b2 (1, H)       f32
            pinned(w3_row),                      # W3 (1, H) row   f32
            pinned(b3),                          # b3 (1, 1)       f32
        ],
        out_specs=batch_spec(out_size),
        compiler_params=pltpu.CompilerParams(
            dimension_semantics=dim_sem,
            vmem_limit_bytes=int(budget)),
        cost_estimate=pl.CostEstimate(flops=flops, transcendentals=0,
                                      bytes_accessed=bytes_accessed),
    )(state, action, w1, b1, w2, b2, w3_row, b3)


def init_critic_params(key, state_dim, action_dim, hidden_size, output_size=1,
                       *, mxu_dtype=jnp.bfloat16, lane_multiple=128):
    """torch.nn.Linear-style U(-1/sqrt(fan_in), +1/sqrt(fan_in)) init, laid out
    for the kernel:
      * weights stored (in_features, out_features) so the kernel does x @ W + b,
      * hidden zero-padded to a multiple of `lane_multiple` (128 minimum; 256
        fills a v6e/v7x MXU tile) -- padding is numerically inert,
      * matmul weights cast to `mxu_dtype` (bf16 -> native-rate MXU, f32 acc),
      * W3 kept as an f32 (1, H) row for the in-kernel VPU reduction.
    """
    assert output_size == 1, "kernel's final VPU reduction assumes output_size == 1"
    in_dim = state_dim + action_dim
    h_pad = -(-hidden_size // lane_multiple) * lane_multiple
    ks = jax.random.split(key, 6)

    def linear(kw, kb, fan_in, fan_out, rows, cols):
        bound = 1.0 / (fan_in ** 0.5)
        w = jax.random.uniform(kw, (fan_in, fan_out), jnp.float32, -bound, bound)
        b = jax.random.uniform(kb, (1, fan_out), jnp.float32, -bound, bound)
        w_pad = jnp.zeros((rows, cols), jnp.float32).at[:fan_in, :fan_out].set(w)
        b_pad = jnp.zeros((1, cols), jnp.float32).at[:, :fan_out].set(b)
        return w_pad, b_pad

    w1, b1 = linear(ks[0], ks[1], in_dim, hidden_size, in_dim, h_pad)
    w2, b2 = linear(ks[2], ks[3], hidden_size, hidden_size, h_pad, h_pad)
    w3, b3 = linear(ks[4], ks[5], hidden_size, output_size, h_pad, output_size)

    w3_row = jnp.transpose(w3)                   # (1, h_pad), f32 for the VPU
    return (w1.astype(mxu_dtype), b1, w2.astype(mxu_dtype), b2, w3_row, b3)


if __name__ == "__main__":
    key = jax.random.PRNGKey(0)
    k_state, k_action, k_params = jax.random.split(key, 3)

    batch = 2
    state_dim = 6
    action_dim = 2
    hidden = 32

    state = jax.random.normal(k_state, (batch, state_dim), jnp.float32)
    action = jax.random.normal(k_action, (batch, action_dim), jnp.float32)
    params = init_critic_params(k_params, state_dim, action_dim, hidden,
                                output_size=1)

    q = critic_forward(state, action, params)
    jax.block_until_ready(q)

    # Pure-JAX reference with identical numerics (bf16 MXU operands, f32 acc,
    # f32 elementwise) in the original concat formulation.
    w1, b1, w2, b2, w3_row, b3 = params
    x = jnp.concatenate([state, action], axis=1)
    h = jnp.maximum(jnp.dot(x.astype(w1.dtype), w1,
                            preferred_element_type=jnp.float32) + b1, 0.0)
    h = jnp.maximum(jnp.dot(h.astype(w2.dtype), w2,
                            preferred_element_type=jnp.float32) + b2, 0.0)
    ref = jnp.sum(h * w3_row, axis=-1, keepdims=True) + b3

    assert q.shape == (batch, 1)
    assert jnp.allclose(q, ref, atol=5e-3, rtol=5e-3), (
        "mismatch vs reference: max|d|=%s" % jnp.max(jnp.abs(q - ref)))

    print("KERNEL_OK")
</pallas_src>

<mosaic_0001>
module attributes {stable_mosaic.version = 11 : i64} {
  func.func @_critic_kernel(%arg0: i32, %arg1: memref<2x6xf32, #tpu.memory_space<vmem>>, %arg2: memref<2x2xf32, #tpu.memory_space<vmem>>, %arg3: memref<8x128xbf16, #tpu.memory_space<vmem>>, %arg4: memref<1x128xf32, #tpu.memory_space<vmem>>, %arg5: memref<128x128xbf16, #tpu.memory_space<vmem>>, %arg6: memref<1x128xf32, #tpu.memory_space<vmem>>, %arg7: memref<1x128xf32, #tpu.memory_space<vmem>>, %arg8: memref<1x1xf32, #tpu.memory_space<vmem>>, %arg9: memref<2x1xf32, #tpu.memory_space<vmem>>) attributes {dimension_semantics = [#tpu.dimension_semantics<parallel>], iteration_bounds = array<i64: 1>, scalar_prefetch = 0 : i64, scratch_operands = 0 : i64, tpu.core_type = #tpu.core_type<tc>, window_params = [{transform_indices = @transform_0, window_bounds = array<i64: 2, 6>}, {transform_indices = @transform_1, window_bounds = array<i64: 2, 2>}, {pipeline_mode = #tpu.pipeline_mode<synchronous>, transform_indices = @transform_2, window_bounds = array<i64: 8, 128>}, {pipeline_mode = #tpu.pipeline_mode<synchronous>, transform_indices = @transform_3, window_bounds = array<i64: 1, 128>}, {pipeline_mode = #tpu.pipeline_mode<synchronous>, transform_indices = @transform_4, window_bounds = array<i64: 128, 128>}, {pipeline_mode = #tpu.pipeline_mode<synchronous>, transform_indices = @transform_5, window_bounds = array<i64: 1, 128>}, {pipeline_mode = #tpu.pipeline_mode<synchronous>, transform_indices = @transform_6, window_bounds = array<i64: 1, 128>}, {pipeline_mode = #tpu.pipeline_mode<synchronous>, transform_indices = @transform_7, window_bounds = array<i64: 1, 1>}, {transform_indices = @transform_8, window_bounds = array<i64: 2, 1>}]} {
    %c0 = arith.constant 0 : index
    %c0_0 = arith.constant 0 : index
    %0 = vector.load %arg1[%c0, %c0_0] : memref<2x6xf32, #tpu.memory_space<vmem>>, vector<2x6xf32>
    %c0_1 = arith.constant 0 : index
    %c0_2 = arith.constant 0 : index
    %1 = vector.load %arg2[%c0_1, %c0_2] : memref<2x2xf32, #tpu.memory_space<vmem>>, vector<2x2xf32>
    %2 = tpu.concatenate %0, %1 in 1 : vector<2x6xf32>, vector<2x2xf32> -> vector<2x8xf32>
    %3 = arith.truncf %2 : vector<2x8xf32> to vector<2x8xbf16>
    %c0_3 = arith.constant 0 : index
    %c0_4 = arith.constant 0 : index
    %4 = vector.load %arg3[%c0_3, %c0_4] : memref<8x128xbf16, #tpu.memory_space<vmem>>, vector<8x128xbf16>
    %cst = arith.constant dense<0.000000e+00> : vector<2x128xf32>
    %5 = tpu.matmul %3, %4, %cst {dimension_numbers = #tpu.dot_dimension_numbers<[1], [0], [0], [1], [0, 0, 1, 1], [], []>} : vector<2x8xbf16>, vector<8x128xbf16>, vector<2x128xf32> -> vector<2x128xf32>
    %c0_5 = arith.constant 0 : index
    %c0_6 = arith.constant 0 : index
    %6 = vector.load %arg4[%c0_5, %c0_6] : memref<1x128xf32, #tpu.memory_space<vmem>>, vector<1x128xf32>
    %7 = vector.broadcast %6 : vector<1x128xf32> to vector<2x128xf32>
    %8 = arith.addf %5, %7 : vector<2x128xf32>
    %cst_7 = arith.constant 0.000000e+00 : f32
    %9 = vector.broadcast %cst_7 : f32 to vector<2x128xf32>
    %10 = arith.maximumf %8, %9 : vector<2x128xf32>
    %11 = arith.truncf %10 : vector<2x128xf32> to vector<2x128xbf16>
    %c0_8 = arith.constant 0 : index
    %c0_9 = arith.constant 0 : index
    %12 = vector.load %arg5[%c0_8, %c0_9] : memref<128x128xbf16, #tpu.memory_space<vmem>>, vector<128x128xbf16>
    %cst_10 = arith.constant dense<0.000000e+00> : vector<2x128xf32>
    %13 = tpu.matmul %11, %12, %cst_10 {dimension_numbers = #tpu.dot_dimension_numbers<[1], [0], [0], [1], [0, 0, 1, 1], [], []>} : vector<2x128xbf16>, vector<128x128xbf16>, vector<2x128xf32> -> vector<2x128xf32>
    %c0_11 = arith.constant 0 : index
    %c0_12 = arith.constant 0 : index
    %14 = vector.load %arg6[%c0_11, %c0_12] : memref<1x128xf32, #tpu.memory_space<vmem>>, vector<1x128xf32>
    %15 = vector.broadcast %14 : vector<1x128xf32> to vector<2x128xf32>
    %16 = arith.addf %13, %15 : vector<2x128xf32>
    %cst_13 = arith.constant 0.000000e+00 : f32
    %17 = vector.broadcast %cst_13 : f32 to vector<2x128xf32>
    %18 = arith.maximumf %16, %17 : vector<2x128xf32>
    %c0_14 = arith.constant 0 : index
    %c0_15 = arith.constant 0 : index
    %19 = vector.load %arg7[%c0_14, %c0_15] : memref<1x128xf32, #tpu.memory_space<vmem>>, vector<1x128xf32>
    %20 = vector.broadcast %19 : vector<1x128xf32> to vector<2x128xf32>
    %21 = arith.mulf %18, %20 : vector<2x128xf32>
    %cst_16 = arith.constant dense<0.000000e+00> : vector<2xf32>
    %22 = vector.multi_reduction <add>, %21, %cst_16 [1] : vector<2x128xf32> to vector<2xf32>
    %23 = vector.shape_cast %22 : vector<2xf32> to vector<2x1xf32>
    %c0_17 = arith.constant 0 : index
    %c0_18 = arith.constant 0 : index
    %24 = vector.load %arg8[%c0_17, %c0_18] : memref<1x1xf32, #tpu.memory_space<vmem>>, vector<1x1xf32>
    %25 = vector.broadcast %24 : vector<1x1xf32> to vector<2x1xf32>
    %26 = arith.addf %23, %25 : vector<2x1xf32>
    %c0_19 = arith.constant 0 : index
    %c0_20 = arith.constant 0 : index
    %27 = vector.load %arg9[%c0_19, %c0_20] : memref<2x1xf32, #tpu.memory_space<vmem>>, vector<2x1xf32>
    tpu.vector_store %arg9[%c0_19, %c0_20], %26 {strides = array<i32>} : memref<2x1xf32, #tpu.memory_space<vmem>>, vector<2x1xf32>,
    return
  }
  func.func @transform_0(%arg0: i32) -> (i32, i32) {
    %c0_i32 = arith.constant 0 : i32
    %c0_i32_0 = arith.constant 0 : i32
    return %arg0, %c0_i32 : i32, i32
  }
  func.func @transform_1(%arg0: i32) -> (i32, i32) {
    %c0_i32 = arith.constant 0 : i32
    %c0_i32_0 = arith.constant 0 : i32
    return %arg0, %c0_i32 : i32, i32
  }
  func.func @transform_2(%arg0: i32) -> (i32, i32) {
    %c0_i32 = arith.constant 0 : i32
    %c0_i32_0 = arith.constant 0 : i32
    %c0_i32_1 = arith.constant 0 : i32
    return %c0_i32, %c0_i32_0 : i32, i32
  }
  func.func @transform_3(%arg0: i32) -> (i32, i32) {
    %c0_i32 = arith.constant 0 : i32
    %c0_i32_0 = arith.constant 0 : i32
    %c0_i32_1 = arith.constant 0 : i32
    return %c0_i32, %c0_i32_0 : i32, i32
  }
  func.func @transform_4(%arg0: i32) -> (i32, i32) {
    %c0_i32 = arith.constant 0 : i32
    %c0_i32_0 = arith.constant 0 : i32
    %c0_i32_1 = arith.constant 0 : i32
    return %c0_i32, %c0_i32_0 : i32, i32
  }
  func.func @transform_5(%arg0: i32) -> (i32, i32) {
    %c0_i32 = arith.constant 0 : i32
    %c0_i32_0 = arith.constant 0 : i32
    %c0_i32_1 = arith.constant 0 : i32
    return %c0_i32, %c0_i32_0 : i32, i32
  }
  func.func @transform_6(%arg0: i32) -> (i32, i32) {
    %c0_i32 = arith.constant 0 : i32
    %c0_i32_0 = arith.constant 0 : i32
    %c0_i32_1 = arith.constant 0 : i32
    return %c0_i32, %c0_i32_0 : i32, i32
  }
  func.func @transform_7(%arg0: i32) -> (i32, i32) {
    %c0_i32 = arith.constant 0 : i32
    %c0_i32_0 = arith.constant 0 : i32
    %c0_i32_1 = arith.constant 0 : i32
    return %c0_i32, %c0_i32_0 : i32, i32
  }
  func.func @transform_8(%arg0: i32) -> (i32, i32) {
    %c0_i32 = arith.constant 0 : i32
    %c0_i32_0 = arith.constant 0 : i32
    return %arg0, %c0_i32 : i32, i32
  }
}

</mosaic_0001>

<bundles_post_ra>
// kernel: tpu_custom_call.1
= control target key start
LH: loop header
LB: loop body
LE: loop exit
PB: predicated region body
PF: predicated region fallthrough
CT: control target
= control target key end

     0   :  { %s482_s0 = inlined_call_operand.vmem [shape: f32[2,6], index: 0, kind: input, shape index: {}]   ;;  %s483_s1 = inlined_call_operand.hbm [shape: f32[2,2], index: 1, kind: input, shape index: {}]   ;;  %s484_s2 = inlined_call_operand.vmem [shape: bf16[8,128], index: 2, kind: input, shape index: {}]   ;;  %s485_s3 = inlined_call_operand.vmem [shape: f32[1,128], index: 3, kind: input, shape index: {}]   ;;  %s486_s4 = inlined_call_operand.hbm [shape: bf16[128,128], index: 4, kind: input, shape index: {}]   ;;  %s487_s5 = inlined_call_operand.vmem [shape: f32[1,128], index: 5, kind: input, shape index: {}]   ;;  %s488_s6 = inlined_call_operand.vmem [shape: f32[1,128], index: 6, kind: input, shape index: {}]   ;;  %s489_s7 = inlined_call_operand.<no memory space> [shape: f32[1,1], index: 7, kind: input, shape index: {}]   ;;  %s490_s8 = inlined_call_operand.vmem [shape: f32[2,1], index: 8, kind: output, shape index: {}]  }
   0x1   :  { %v13_v0 = vstv %s489_s7 }
   0x2   :  { %14 = vst [vmem:[#allocation2] sm:$0x1] %v13_v0 }
   0x3   :  { %15 = vsyncpa [#allocation4], 0 }
   0x4   :  { %16 = vsyncpa [#allocation6], 0  ;;  %s378_s29 = smov [#allocation3]   ;;  %s379_s9 = smov [#allocation5]  }
   0x5   :  { %s25_s30 = sshll.u32 %s378_s29, 4  ;;  %s38_s10 = sshll.u32 %s379_s9, 4  ;;  %s26_s30 = int_to_ptr.vmem [resolvable:$true] %s25_s30  ;;  %s433_s10 = int_to_ptr.vmem [resolvable:$true] %s38_s10 }
   0x6   :  { %s330_s13 = scalar_lea.hbm %s483_s1, 32 }
   0x7   :  { %p331_p0 = scmp.ne.s32.totalorder %s483_s1, %s330_s13  ;;  %p334_p1 = scmp.lt.u32.totalorder %s330_s13, %s483_s1 }
   0x9   :  { %p336_p2 = pnand %p334_p1, %p331_p0 }
   0xb   :  { %339 = shalt.err (!%p336_p2)
}
   0xc   :  { %s340_s17 = scalar_lea.vmem %s26_s30, 32  ;;  %p345_p4 = scmp.lt.s32.totalorder %s26_s30, %s26_s30 }
   0xd   :  { %p341_p3 = scmp.ne.s32.totalorder %s26_s30, %s340_s17  ;;  %p346_p5 = scmp.lt.s32.totalorder %s340_s17, %s340_s17 }
   0xf   :  { %p347_p6 = por %p346_p5, %p345_p4 }
  0x11   :  { %p348_p7 = pnand %p347_p6, %p341_p3 }
  0x13   :  { %351 = shalt.err (!%p348_p7)
}
  0x14   :  { %28 = dma.hbm_to_vmem [thread:$0]  %s483_s1, 32, %s26_s30, [#allocation4]  }
  0x15   :  { %s352_s22 = scalar_lea.hbm %s486_s4, 1024 }
  0x16   :  { %p353_p8 = scmp.ne.s32.totalorder %s486_s4, %s352_s22  ;;  %p356_p9 = scmp.lt.u32.totalorder %s352_s22, %s486_s4 }
  0x18   :  { %p358_p10 = pnand %p356_p9, %p353_p8 }
  0x1a   :  { %361 = shalt.err (!%p358_p10)
}
  0x1b   :  { %s362_s27 = scalar_lea.vmem %s433_s10, 1024  ;;  %p367_p12 = scmp.lt.s32.totalorder %s433_s10, %s433_s10 }
  0x1c   :  { %p363_p11 = scmp.ne.s32.totalorder %s433_s10, %s362_s27  ;;  %p368_p13 = scmp.lt.s32.totalorder %s362_s27, %s362_s27 }
  0x1e   :  { %p369_p0 = por %p368_p13, %p367_p12 }
  0x20   :  { %p370_p1 = pnand %p369_p0, %p363_p11 }
  0x22   :  { %373 = shalt.err (!%p370_p1)
}
  0x23   :  { %s380_s1 = smov 64   ;;  %s381_s28 = smov 4  }
  0x24   :  { %44 = dma.hbm_to_vmem [thread:$0]  %s486_s4, 1024, %s433_s10, [#allocation6], %s380_s1, %s380_s1, %s381_s28  }
  0x25   :  { %374 = dma.done.wait [#allocation4], 32  }
  0x26   :  { %375 = vsyncadd [#allocation4], 4294967264 }
  0x27   :  { %376 = dma.done.wait [#allocation6], 1024  }
  0x28   :  { %377 = vsyncadd [#allocation6], 4294966272  ;;  %v382_v1 = vmov 0.0   ;;  %vm383_vm0 = vmmov 0   ;;  %vm79_vm1 = vcmask 1043456   ;;  %s384_s12 = smov 6  }
  0x29   :  { %289 = vmatprep.subr.bf16.mxu0 %v382_v1  ;;  %295 = vmatprep.subr.bf16.mxu1 %v382_v1  ;;  %v59_v2 = vld [vmem:[#allocation3] sm:$0x3]  ;;  %v322_v5 = vld [vmem:[#allocation5] sm:$0xff]   ;;  %v323_v6 = vld [vmem:[#allocation5 + $0x8] sm:$0xff]   ;;  %vm64_vm2 = vcmask 48128   ;;  %vm75_vm3 = vcmask 64512  }
  0x2a   :  { %291 = vmatprep.mubr.msk.bf16.mxu0 %vm383_vm0, %v382_v1  ;;  %311 = vmatprep.mubr.msk.bf16.mxu1 %vm383_vm0, %v382_v1  ;;  %v67_v3 = vld [vmem:[%s484_s2] sm:$0xf]  ;;  %v324_v7 = vld [vmem:[#allocation5 + $0x10] sm:$0xff]   ;;  %v327_v10 = vld [vmem:[#allocation5 + $0x28] sm:$0xff]   ;;  %vm245_vm4 = vcmask 1041408   ;;  %vm257_vm5 = vcmask 1024  }
  0x2b   :  { %61 = vrot.lane.b32.xlu0 %v59_v2, %s384_s12  ;;  %v81_v4 = vsel %vm79_vm1, %v67_v3, 0  ;;  %296 = vmatpush3.bf16.msra.mxu1 %v322_v5  ;;  %v325_v8 = vld [vmem:[#allocation5 + $0x18] sm:$0xff]   ;;  %v326_v9 = vld [vmem:[#allocation5 + $0x20] sm:$0xff]   ;;  %v328_v15 = vld [vmem:[#allocation5 + $0x30] sm:$0xff]  }
  0x2c   :  { %290 = vmatpush3.bf16.msra.mxu0 %v81_v4  ;;  %297 = vmatprep.subr.bf16.mxu1 %v382_v1  ;;  %v58_v11 = vld [vmem:[%s482_s0] sm:$0x3] }
  0x2d   :  { %v329_v16 = vld [vmem:[#allocation5 + $0x38] sm:$0xff]  }
  0x2e   :  { %v265_v17 = vld [vmem:[%s485_s3] ss:$0 sm:$0xff] }
  0x2f   :  { %298 = vmatpush3.bf16.msra.mxu1 %v323_v6  ;;  %v267_v25 = vld [vmem:[%s487_s5] ss:$0 sm:$0xff] }
  0x30   :  { %299 = vmatprep.subr.bf16.mxu1 %v382_v1  ;;  %v276_v30 = vld [vmem:[%s488_s6] ss:$0 sm:$0xff] }
  0x31   :  { %v277_v35 = vld [vmem:[#allocation2] ss:$0 sm:$0xff] }
  0x33   :  { %300 = vmatpush3.bf16.msra.mxu1 %v324_v7 }
  0x34   :  { %301 = vmatprep.subr.bf16.mxu1 %v382_v1 }
  0x37   :  { %302 = vmatpush3.bf16.msra.mxu1 %v325_v8 }
  0x38   :  { %303 = vmatprep.subr.bf16.mxu1 %v382_v1 }
  0x3b   :  { %304 = vmatpush3.bf16.msra.mxu1 %v326_v9 }
  0x3c   :  { %305 = vmatprep.subr.bf16.mxu1 %v382_v1 }
  0x3f   :  { %306 = vmatpush3.bf16.msra.mxu1 %v327_v10 }
  0x40   :  { %307 = vmatprep.subr.bf16.mxu1 %v382_v1 }
  0x43   :  { %308 = vmatpush3.bf16.msra.mxu1 %v328_v15 }
  0x44   :  { %309 = vmatprep.subr.bf16.mxu1 %v382_v1 }
  0x47   :  { %310 = vmatpush3.bf16.msra.mxu1 %v329_v16 }
  0x9d   :  { %v62_v12 = vpop.permute.xlu0 %61 }
  0x9e   :  { %v65_v13 = vsel %vm64_vm2, %v58_v11, %v62_v12 }
  0x9f   :  { %v66_v14 = vpack.c.bf16 %v65_v13, %v65_v13 }
  0xa1   :  { %292 = vmatmul.mubr.msk.bf16.vlgmr.msra.gmra.mrb[0].mxu0 %vm75_vm3, %v66_v14 }
 0x174   :  { %v117_v18 = vpop.f32.mrb[0].mxu0 }
 0x175   :  { %v118_v19 = vadd.f32 %v265_v17, %v117_v18  ;;  %v293_v20 = vpop.f32.mrb[1].mxu0 }
 0x176   :  { %v120_v21 = vpop.f32.mrb[2].mxu0 }
 0x177   :  { %v123_v22 = vmax.f32 %v118_v19, 0.0  ;;  %v294_v23 = vpop.f32.mrb[3].mxu0 }
 0x179   :  { %v124_v24 = vpack.c.bf16 %v123_v22, %v123_v22 }
 0x17b   :  { %312 = vmatmul.mubr.bf16.vlgmr.msra.gmra.mrb[0].mxu1 %v124_v24 }
 0x24e   :  { %v230_v26 = vpop.f32.mrb[0].mxu1 }
 0x24f   :  { %v231_v27 = vadd.f32 %v267_v25, %v230_v26  ;;  %v313_v28 = vpop.f32.mrb[1].mxu1 }
 0x250   :  { %v233_v29 = vpop.f32.mrb[2].mxu1 }
 0x251   :  { %v236_v31 = vmax.f32 %v231_v27, 0.0  ;;  %v314_v32 = vpop.f32.mrb[3].mxu1 }
 0x253   :  { %v244_v33 = vmul.f32 %v276_v30, %v236_v31 }
 0x255   :  { %v246_v34 = vsel %vm245_vm4, %v244_v33, 0.0 }
 0x256   :  { %247 = vadd.xlane.f32.xlu0 %v246_v34 }
 0x2e3   :  { %v248_v36 = vpop.xlane.xlu0 %247 }
 0x2e4   :  { %v256_v37 = vadd.f32 %v277_v35, %v248_v36 }
 0x2e6   :  { %258 = vst.msk [vmem:[%s490_s8] sm:$0x3] %vm257_vm5, %v256_v37 }
 0x2e7   :  { %263 = vsyncpa [#allocation4], 1 }
 0x2e8   :  { %264 = vsyncpa [#allocation6], 1 }

</bundles_post_ra>
